<compile_context>
chip_gen: v5e
topology: v5e:2x2
jax: 0.10.0
libtpu: 0.0.40
codegen_flags: <defaults>
</compile_context>

<pallas_src>
import jax
import jax.numpy as jnp
from jax.experimental import pallas as pl
from jax.experimental.pallas import tpu as pltpu


def _round_up(x: int, m: int) -> int:
    return ((x + m - 1) // m) * m


def _localization_kernel(x_ref, w_ref, b_ref, o_ref):
    # x_ref: (TILE_R, P*D)  w_ref: (P*D, P*3S)  b_ref: (1, P*3S)  o_ref: (TILE_R, P*3S)
    o_ref[...] = (
        jnp.dot(x_ref[...], w_ref[...], preferred_element_type=jnp.float32)
        + b_ref[...]
    )


def fuse_localization_params(w_sa, w_az, w_el, b_sa, b_az, b_el):
    """Fuse the three PyTorch Linear heads (weights [S, D], biases [S]) into
    W_cat [D, 3S] / b_cat [3S] with az/el interleaved per source so that
    out[..., S:] reshapes directly to (..., S, 2) == cat(az[...,None], el[...,None])."""
    S, D = w_sa.shape
    w_doa = jnp.stack([w_az, w_el], axis=1).reshape(2 * S, D)   # [az0, el0, az1, el1, ...]
    b_doa = jnp.stack([b_az, b_el], axis=1).reshape(2 * S)
    w_cat = jnp.concatenate([w_sa, w_doa], axis=0).T            # [D, 3S]
    b_cat = jnp.concatenate([b_sa, b_doa], axis=0)              # [3S]
    return w_cat, b_cat


def localization_output(x, w_cat, b_cat, max_num_sources,
                        *, use_bf16=False, tile_rows=4096):
    """x: [N, T, D] float32; w_cat: [D, 3S] (az/el interleaved); b_cat: [3S].

    Returns (source_activity [N, T, S], direction_of_arrival [N, T, S, 2]).
    """
    N, T, D = x.shape
    C = w_cat.shape[1]
    S = max_num_sources
    assert C == 3 * S

    M = N * T

    # ---- Lane packing: fold P consecutive rows into one 128-wide row --------
    P = 128 // D if (D <= 128 and 128 % D == 0) else 1
    Dp = P * D          # packed input width  (== 128 when packing applies)
    Cp = P * C          # packed output width

    if P > 1:
        # Block-diagonal fused weight [P*D, P*C]: P copies of w_cat on the diagonal.
        eye = jnp.eye(P, dtype=w_cat.dtype)
        w_block = (eye[:, None, :, None] * w_cat[None, :, None, :]).reshape(Dp, Cp)
        b_block = jnp.tile(b_cat, P)
    else:
        w_block, b_block = w_cat, b_cat

    # ---- Pad the row axis so packed rows divide into (8,128)-aligned tiles --
    rows = (M + P - 1) // P
    tile_r = _round_up(min(tile_rows, _round_up(rows, 8)), 8)
    rows_pad = _round_up(rows, tile_r)
    M_pad = rows_pad * P

    x_flat = x.reshape(M, D)
    if M_pad != M:
        x_flat = jnp.pad(x_flat, ((0, M_pad - M), (0, 0)))
    x_packed = x_flat.reshape(rows_pad, Dp)

    # ---- Optional bf16 cast (halves HBM traffic; accumulation stays f32) ----
    compute_dtype = jnp.bfloat16 if use_bf16 else x.dtype
    x_packed = x_packed.astype(compute_dtype)
    w_block = w_block.astype(compute_dtype)
    b_row = b_block.reshape(1, Cp).astype(jnp.float32)

    grid = (rows_pad // tile_r,)

    out_packed = pl.pallas_call(
        _localization_kernel,
        out_shape=jax.ShapeDtypeStruct((rows_pad, Cp), jnp.float32),
        grid=grid,
        in_specs=[
            pl.BlockSpec((tile_r, Dp), lambda i: (i, 0)),  # streamed x tiles
            pl.BlockSpec((Dp, Cp), lambda i: (0, 0)),      # weight stays resident
            pl.BlockSpec((1, Cp), lambda i: (0, 0)),       # bias stays resident
        ],
        out_specs=pl.BlockSpec((tile_r, Cp), lambda i: (i, 0)),
        compiler_params=pltpu.CompilerParams(
            dimension_semantics=("parallel",),   # shard row tiles across TCs (v7x)
            vmem_limit_bytes=32 << 20,           # safe on v5e/v6e/v7x for default tile
        ),
    )(x_packed, w_block, b_row)

    # ---- Un-pack and split (cheap reshapes; no stack/transpose needed) ------
    out = out_packed.reshape(M_pad, C)[:M].reshape(N, T, C)
    source_activity = out[..., :S]
    direction_of_arrival = out[..., S:].reshape(N, T, S, 2)
    return source_activity, direction_of_arrival


if __name__ == "__main__":
    # Shapes implied by the module: input [N, T, D], S = max_num_sources.
    N, T, D, S = 2, 8, 32, 4

    key = jax.random.PRNGKey(0)
    kx, kw_sa, kw_az, kw_el, kb_sa, kb_az, kb_el = jax.random.split(key, 7)

    x = jax.random.normal(kx, (N, T, D), dtype=jnp.float32)

    # Deterministic parameter init (PyTorch Linear stores W as [S, D]).
    bound = 1.0 / jnp.sqrt(D)
    w_sa = jax.random.uniform(kw_sa, (S, D), jnp.float32, -bound, bound)
    w_az = jax.random.uniform(kw_az, (S, D), jnp.float32, -bound, bound)
    w_el = jax.random.uniform(kw_el, (S, D), jnp.float32, -bound, bound)
    b_sa = jax.random.uniform(kb_sa, (S,), jnp.float32, -bound, bound)
    b_az = jax.random.uniform(kb_az, (S,), jnp.float32, -bound, bound)
    b_el = jax.random.uniform(kb_el, (S,), jnp.float32, -bound, bound)

    w_cat, b_cat = fuse_localization_params(w_sa, w_az, w_el, b_sa, b_az, b_el)

    sa, doa = localization_output(x, w_cat, b_cat, S)
    jax.block_until_ready((sa, doa))

    # Reference check in plain JAX (forward has no sigmoid; match it).
    sa_ref = x @ w_sa.T + b_sa
    az_ref = x @ w_az.T + b_az
    el_ref = x @ w_el.T + b_el
    doa_ref = jnp.stack([az_ref, el_ref], axis=-1)

    assert sa.shape == (N, T, S)
    assert doa.shape == (N, T, S, 2)
    assert jnp.allclose(sa, sa_ref, atol=1e-5)
    assert jnp.allclose(doa, doa_ref, atol=1e-5)

    print("KERNEL_OK")
</pallas_src>

<mosaic_0001>
module attributes {stable_mosaic.version = 11 : i64} {
  func.func @_localization_kernel(%arg0: i32, %arg1: memref<8x128xf32, #tpu.memory_space<vmem>>, %arg2: memref<128x48xf32, #tpu.memory_space<vmem>>, %arg3: memref<1x48xf32, #tpu.memory_space<vmem>>, %arg4: memref<8x48xf32, #tpu.memory_space<vmem>>) attributes {dimension_semantics = [#tpu.dimension_semantics<parallel>], iteration_bounds = array<i64: 1>, scalar_prefetch = 0 : i64, scratch_operands = 0 : i64, tpu.core_type = #tpu.core_type<tc>, window_params = [{transform_indices = @transform_0, window_bounds = array<i64: 8, 128>}, {pipeline_mode = #tpu.pipeline_mode<synchronous>, transform_indices = @transform_1, window_bounds = array<i64: 128, 48>}, {pipeline_mode = #tpu.pipeline_mode<synchronous>, transform_indices = @transform_2, window_bounds = array<i64: 1, 48>}, {transform_indices = @transform_3, window_bounds = array<i64: 8, 48>}]} {
    %c0 = arith.constant 0 : index
    %c0_0 = arith.constant 0 : index
    %0 = vector.load %arg1[%c0, %c0_0] : memref<8x128xf32, #tpu.memory_space<vmem>>, vector<8x128xf32>
    %c0_1 = arith.constant 0 : index
    %c0_2 = arith.constant 0 : index
    %1 = vector.load %arg2[%c0_1, %c0_2] : memref<128x48xf32, #tpu.memory_space<vmem>>, vector<128x48xf32>
    %cst = arith.constant dense<0.000000e+00> : vector<8x48xf32>
    %2 = tpu.matmul %0, %1, %cst {dimension_numbers = #tpu.dot_dimension_numbers<[1], [0], [0], [1], [0, 0, 1, 1], [], []>} : vector<8x128xf32>, vector<128x48xf32>, vector<8x48xf32> -> vector<8x48xf32>
    %c0_3 = arith.constant 0 : index
    %c0_4 = arith.constant 0 : index
    %3 = vector.load %arg3[%c0_3, %c0_4] : memref<1x48xf32, #tpu.memory_space<vmem>>, vector<1x48xf32>
    %4 = vector.broadcast %3 : vector<1x48xf32> to vector<8x48xf32>
    %5 = arith.addf %2, %4 : vector<8x48xf32>
    %c0_5 = arith.constant 0 : index
    %c0_6 = arith.constant 0 : index
    %6 = vector.load %arg4[%c0_5, %c0_6] : memref<8x48xf32, #tpu.memory_space<vmem>>, vector<8x48xf32>
    tpu.vector_store %arg4[%c0_5, %c0_6], %5 {strides = array<i32>} : memref<8x48xf32, #tpu.memory_space<vmem>>, vector<8x48xf32>,
    return
  }
  func.func @transform_0(%arg0: i32) -> (i32, i32) {
    %c0_i32 = arith.constant 0 : i32
    %c0_i32_0 = arith.constant 0 : i32
    return %arg0, %c0_i32 : i32, i32
  }
  func.func @transform_1(%arg0: i32) -> (i32, i32) {
    %c0_i32 = arith.constant 0 : i32
    %c0_i32_0 = arith.constant 0 : i32
    %c0_i32_1 = arith.constant 0 : i32
    return %c0_i32, %c0_i32_0 : i32, i32
  }
  func.func @transform_2(%arg0: i32) -> (i32, i32) {
    %c0_i32 = arith.constant 0 : i32
    %c0_i32_0 = arith.constant 0 : i32
    %c0_i32_1 = arith.constant 0 : i32
    return %c0_i32, %c0_i32_0 : i32, i32
  }
  func.func @transform_3(%arg0: i32) -> (i32, i32) {
    %c0_i32 = arith.constant 0 : i32
    %c0_i32_0 = arith.constant 0 : i32
    return %arg0, %c0_i32 : i32, i32
  }
}

</mosaic_0001>

<bundles_post_ra>
// kernel: tpu_custom_call.1
= control target key start
LH: loop header
LB: loop body
LE: loop exit
PB: predicated region body
PF: predicated region fallthrough
CT: control target
= control target key end

     0   :  { %s180_s0 = inlined_call_operand.vmem [shape: f32[8,128], index: 0, kind: input, shape index: {}]   ;;  %s181_s1 = inlined_call_operand.vmem [shape: f32[128,48], index: 1, kind: input, shape index: {}]   ;;  %s182_s2 = inlined_call_operand.vmem [shape: f32[1,48], index: 2, kind: input, shape index: {}]   ;;  %s183_s3 = inlined_call_operand.hbm [shape: f32[8,48], index: 3, kind: output, shape index: {}]  }
   0x1   :  { %v31_v0 = vld [vmem:[%s181_s1 + $0x78] sm:$0xff]  ;;  %v30_v1 = vld [vmem:[%s181_s1 + $0x70] sm:$0xff]  ;;  %v29_v2 = vld [vmem:[%s181_s1 + $0x68] sm:$0xff] }
   0x2   :  { %36 = vmatpush.msra.mxu0 %v31_v0  ;;  %v28_v3 = vld [vmem:[%s181_s1 + $0x60] sm:$0xff]  ;;  %v27_v4 = vld [vmem:[%s181_s1 + $0x58] sm:$0xff] }
   0x4   :  { %37 = vmatpush.msra.mxu0 %v30_v1 }
   0x6   :  { %38 = vmatpush.msra.mxu0 %v29_v2 }
   0x7   :  { %8 = vsyncpa [#allocation3], 0  ;;  %v26_v5 = vld [vmem:[%s181_s1 + $0x50] sm:$0xff]  ;;  %v25_v6 = vld [vmem:[%s181_s1 + $0x48] sm:$0xff]  ;;  %s102_s21 = smov [#allocation2]   ;;  %s65_s25 = sshll.u32 %s183_s3, 4  ;;  %s66_s25 = int_to_ptr.hbm [resolvable:$true] %s65_s25 }
   0x8   :  { %39 = vmatpush.msra.mxu0 %v28_v3  ;;  %v24_v7 = vld [vmem:[%s181_s1 + $0x40] sm:$0xff]  ;;  %v23_v8 = vld [vmem:[%s181_s1 + $0x38] sm:$0xff]  ;;  %v22_v9 = vld [vmem:[%s181_s1 + $0x30] sm:$0xff]  ;;  %s63_s22 = sshll.u32 %s102_s21, 4  ;;  %vm56_vm0 = vcmask 392192   ;;  %s64_s22 = int_to_ptr.vmem [resolvable:$true] %s63_s22 }
   0x9   :  { %v21_v10 = vld [vmem:[%s181_s1 + $0x28] sm:$0xff]  ;;  %v20_v11 = vld [vmem:[%s181_s1 + $0x20] sm:$0xff]  ;;  %v19_v12 = vld [vmem:[%s181_s1 + $0x18] sm:$0xff] }
   0xa   :  { %40 = vmatpush.msra.mxu0 %v27_v4  ;;  %v18_v13 = vld [vmem:[%s181_s1 + $0x10] sm:$0xff]  ;;  %v17_v14 = vld [vmem:[%s181_s1 + $0x8] sm:$0xff]  ;;  %v16_v15 = vld [vmem:[%s181_s1] sm:$0xff] }
   0xb   :  { %v15_v16 = vld [vmem:[%s180_s0] sm:$0xff] }
   0xc   :  { %41 = vmatpush.msra.mxu0 %v26_v5  ;;  %v75_v17 = vld [vmem:[%s182_s2] ss:$0 sm:$0xff] }
   0xe   :  { %42 = vmatpush.msra.mxu0 %v25_v6 }
  0x10   :  { %43 = vmatpush.msra.mxu0 %v24_v7 }
  0x12   :  { %44 = vmatpush.msra.mxu0 %v23_v8 }
  0x14   :  { %45 = vmatpush.msra.mxu0 %v22_v9 }
  0x16   :  { %46 = vmatpush.msra.mxu0 %v21_v10 }
  0x18   :  { %47 = vmatpush.msra.mxu0 %v20_v11 }
  0x1a   :  { %48 = vmatpush.msra.mxu0 %v19_v12 }
  0x1c   :  { %49 = vmatpush.msra.mxu0 %v18_v13 }
  0x1e   :  { %50 = vmatpush.msra.mxu0 %v17_v14 }
  0x20   :  { %51 = vmatpush.msra.mxu0 %v16_v15 }
  0x21   :  { %52 = vmatmul.f32.vlgmr.msra.gmra.mxu0 %v15_v16 }
  0x9e   :  { %v53_v18 = vpop.f32.mrf.mxu0 }
  0x9f   :  { %v54_v19 = vadd.f32 %v75_v17, %v53_v18 }
  0xa1   :  { %57 = vst.msk [vmem:[#allocation2] sm:$0xff] %vm56_vm0, %v54_v19 }
  0xa2   :  { %68 = dma.vmem_to_hbm [thread:$0]  %s64_s22, 128, %s66_s25, [#allocation3]  }
  0xa3   :  { %100 = dma.done.wait [#allocation3], 128  }
  0xa4   :  { %101 = vsyncadd [#allocation3], 4294967168 }
  0xa5   :  { %73 = vsyncpa [#allocation3], 1 }

</bundles_post_ra>
